<compile_context>
chip_gen: v7x
topology: tpu7x:2x2x1
jax: 0.10.0
libtpu: 0.0.40
codegen_flags: <defaults>
</compile_context>

<pallas_src>
import functools

import jax
import jax.numpy as jnp
import numpy as np
from jax import lax
from jax.experimental import pallas as pl
from jax.experimental.pallas import tpu as pltpu


# ----------------------------- Pallas kernel -------------------------------
def lstm_predictor_kernel(
    x_ref,       # (N, D)    input sequence (seq-major, batch folded to 1)
    wih0i_ref,   # (D, 8H)   layer-0 input weights, interleaved gates, layer-1 cols zero
    bias_ref,    # (1, 8H)   interleaved biases: b0 in layer-0 slots, b1 in layer-1 slots
    wcomb_ref,   # (2H, 8H)  fused recurrent weights [[Whh0|Wih1],[0|Whh1]] (interleaved)
    wlin_ref,    # (2H, OP)  final linear: rows [0:H] zero, rows [H:2H] = wlin; OP lane-padded
    blin_ref,    # (1, OP)   final linear bias, lane-padded
    out_ref,     # (N, OP)   per-timestep linear output (padded lanes)
    h_out_ref,   # (1, 2H)   packed final hidden state [h0(N-1), h1(N-1)]
    c_out_ref,   # (1, 2H)   packed final cell state  [c0(N-1), c1(N-1)]
    pre_ref,     # scratch (N, 8H) hoisted per-step pre-gates (incl. both biases)
    hs_ref,      # scratch (N, 2H) per-step packed hidden rows ([h0 | h1] lanes)
):
    n_steps = x_ref.shape[0]
    hidden = wcomb_ref.shape[0] // 2

    # ---- Hoisted batched input projection for all timesteps: one MXU matmul.
    # Interleaved 8H layout => the per-step add below is one full-width add
    # (layer-1 columns of wih0i are zero; bias already carries b1 there).
    pre_ref[...] = (
        jnp.dot(x_ref[...], wih0i_ref[...], preferred_element_type=jnp.float32)
        + bias_ref[...]
    )

    # Pin the fused recurrent weight in vregs only while it is small
    # (16 vregs at H=32); for larger H let vld feed the MXU each step.
    pin_w = (2 * hidden) * (8 * hidden) * 4 <= (64 * 1024)
    w_pinned = wcomb_ref[...] if pin_w else None

    def fused_w():
        return w_pinned if pin_w else wcomb_ref[...]

    def packed_gates(g, c_pack):
        # g: (1, 8H) interleaved [i0,i1,f0,f1,g0,g1,o0,o1]; c_pack: (1, 2H)=[c0,c1].
        s = jax.nn.sigmoid(g)                          # one wide EUP pass
        i_pack = s[:, 0:2 * hidden]
        f_pack = s[:, 2 * hidden:4 * hidden]
        o_pack = s[:, 6 * hidden:8 * hidden]
        g_pack = jnp.tanh(g[:, 4 * hidden:6 * hidden])
        c_new = f_pack * c_pack + i_pack * g_pack      # (1, 2H)
        h_new = o_pack * jnp.tanh(c_new)               # (1, 2H) = [h0(t), h1(t-1)]
        return h_new, c_new

    # ---- Step 0 peeled: recurrent state is all-zero, so no matmul is needed
    # and layer-1 must stay exactly zero (h1(-1)=c1(-1)=0).
    g0 = pre_ref[pl.ds(0, 1), :]
    i0 = jax.nn.sigmoid(g0[:, 0:hidden])
    gg0 = jnp.tanh(g0[:, 4 * hidden:5 * hidden])
    o0 = jax.nn.sigmoid(g0[:, 6 * hidden:7 * hidden])
    c0_first = i0 * gg0                                # forget term drops (c0(-1)=0)
    h0_first = o0 * jnp.tanh(c0_first)
    zeros_h = jnp.zeros((1, hidden), jnp.float32)
    h_pack = jnp.concatenate([h0_first, zeros_h], axis=-1)   # [h0(0), 0]
    c_pack = jnp.concatenate([c0_first, zeros_h], axis=-1)   # [c0(0), 0]

    # ---- Skewed recurrence: ONE fused MXU matmul per step produces
    # [g0(t) | g1(t-1)] (interleaved); the packed nonlinearity yields
    # [h0(t), h1(t-1)] directly in adjacent lanes -> no per-step concat,
    # no second dependent dot.
    def step(t, carry):
        h_p, c_p = carry
        g = pre_ref[pl.ds(t, 1), :] + jnp.dot(
            h_p, fused_w(), preferred_element_type=jnp.float32)
        h_p, c_p = packed_gates(g, c_p)
        hs_ref[pl.ds(t - 1, 1), :] = h_p               # row t-1 holds h1(t-1) in lanes [H:2H]
        return (h_p, c_p)

    unroll = True if n_steps <= 16 else 8
    h_pack, c_pack = lax.fori_loop(1, n_steps, step, (h_pack, c_pack),
                                   unroll=unroll)

    # ---- Epilogue: the skew leaves layer-1 of the final step pending.
    g_last = (jnp.dot(h_pack, fused_w(), preferred_element_type=jnp.float32)
              + bias_ref[...])
    h_last, c_last = packed_gates(g_last, c_pack)      # layer-1 lanes valid; layer-0 unused
    hs_ref[pl.ds(n_steps - 1, 1), :] = h_last

    # ---- Hoisted final Linear: one batched matmul + one lane-dense store.
    # wlin rows [0:H] are zero, so only the h1 lanes of hs contribute.
    out_ref[...] = (
        jnp.dot(hs_ref[...], wlin_ref[...], preferred_element_type=jnp.float32)
        + blin_ref[...]
    )

    # Final states: one packed (1, 2H) store per output (single lane concat).
    h_out_ref[...] = jnp.concatenate(
        [h_pack[:, 0:hidden], h_last[:, hidden:2 * hidden]], axis=-1)
    c_out_ref[...] = jnp.concatenate(
        [c_pack[:, 0:hidden], c_last[:, hidden:2 * hidden]], axis=-1)


# ------------------------ One-time parameter plumbing ------------------------
def _interleave_gate_cols(a0, a1, hidden):
    """(R,4H),(R,4H) -> (R,8H) with column blocks [i0,i1,f0,f1,g0,g1,o0,o1]."""
    r = a0.shape[0]
    return jnp.stack(
        [a0.reshape(r, 4, hidden), a1.reshape(r, 4, hidden)], axis=2
    ).reshape(r, 8 * hidden)


def prepare_params(params, hidden_dim, output_dim=1):
    """Build the fused/interleaved/padded kernel weights once per model."""
    H = hidden_dim
    d = params["wih0"].shape[0]
    o_pad = max(128, ((output_dim + 127) // 128) * 128)

    wih0_i = _interleave_gate_cols(
        params["wih0"], jnp.zeros((d, 4 * H), jnp.float32), H)             # (D, 8H)
    bias_i = _interleave_gate_cols(params["b0"], params["b1"], H)          # (1, 8H)
    w_comb = jnp.concatenate(
        [_interleave_gate_cols(params["whh0"], params["wih1"], H),         # rows: h0
         _interleave_gate_cols(jnp.zeros((H, 4 * H), jnp.float32),
                               params["whh1"], H)],                        # rows: h1
        axis=0)                                                            # (2H, 8H)
    wlin_p = jnp.zeros((2 * H, o_pad), jnp.float32).at[H:, :output_dim].set(
        params["wlin"])
    blin_p = jnp.zeros((1, o_pad), jnp.float32).at[:, :output_dim].set(
        params["blin"])
    return dict(wih0_i=wih0_i, bias_i=bias_i, w_comb=w_comb,
                wlin=wlin_p, blin=blin_p)


# ------------------------------- Forward wrapper -----------------------------
@functools.partial(jax.jit, static_argnums=(2, 3))
def lstm_predictor_forward(x, prepared, hidden_dim, output_dim=1):
    """Mirrors LSTMPredictor.forward.

    x: (N, input_dim)  -- the PyTorch module views it as (N, 1, input_dim),
       which the (seq-first) LSTM treats as seq_len=N, batch=1.
    Returns (out (N, output_dim), hidden_state (2,1,H), cell_state (2,1,H)).
    """
    n, d = x.shape
    H = hidden_dim
    o_pad = prepared["wlin"].shape[1]

    flops = (
        2 * n * d * 8 * H            # hoisted x @ Wih0 (padded to 8H columns)
        + 2 * n * (2 * H) * (8 * H)  # per-step fused recurrent matmul (+ epilogue)
        + 2 * n * (2 * H) * o_pad    # hoisted final Linear
    )
    transcendentals = n * (8 * H + 4 * H)    # sigmoid(8H) + tanh(2H) + tanh(2H) per step
    bytes_accessed = 4 * (
        n * d + d * 8 * H + 8 * H + 2 * H * 8 * H
        + 2 * H * o_pad + o_pad + n * o_pad + 4 * H
    )

    vmem = pl.BlockSpec(memory_space=pltpu.MemorySpace.VMEM)

    out_p, h_fin, c_fin = pl.pallas_call(
        lstm_predictor_kernel,
        out_shape=(
            jax.ShapeDtypeStruct((n, o_pad), jnp.float32),
            jax.ShapeDtypeStruct((1, 2 * H), jnp.float32),
            jax.ShapeDtypeStruct((1, 2 * H), jnp.float32),
        ),
        in_specs=[vmem] * 6,
        out_specs=(vmem, vmem, vmem),
        scratch_shapes=[
            pltpu.VMEM((n, 8 * H), jnp.float32),   # hoisted pre-gates
            pltpu.VMEM((n, 2 * H), jnp.float32),   # packed hidden rows
        ],
        cost_estimate=pl.CostEstimate(
            flops=flops,
            transcendentals=transcendentals,
            bytes_accessed=bytes_accessed,
        ),
    )(
        x,
        prepared["wih0_i"], prepared["bias_i"], prepared["w_comb"],
        prepared["wlin"], prepared["blin"],
    )

    out = out_p[:, :output_dim]
    hidden_state = h_fin.reshape(2, 1, H)   # lanes [0:H]=h0, [H:2H]=h1 -> layer order
    cell_state = c_fin.reshape(2, 1, H)
    return out, hidden_state, cell_state


# -------------------------- Parameter construction --------------------------
def init_params(key, input_dim, hidden_dim, output_dim=1):
    """Deterministic init matching PyTorch shapes (uniform(-1/sqrt(H), 1/sqrt(H)))."""
    ks = jax.random.split(key, 10)
    k_lstm = 1.0 / np.sqrt(hidden_dim)
    k_lin = 1.0 / np.sqrt(hidden_dim)

    def u(k, shape, bound):
        return jax.random.uniform(k, shape, jnp.float32, -bound, bound)

    # PyTorch stores weight_ih_l0: (4H, D); we pre-transpose to (D, 4H) etc.
    wih0 = u(ks[0], (4 * hidden_dim, input_dim), k_lstm).T
    whh0 = u(ks[1], (4 * hidden_dim, hidden_dim), k_lstm).T
    b0 = (u(ks[2], (4 * hidden_dim,), k_lstm)
          + u(ks[3], (4 * hidden_dim,), k_lstm)).reshape(1, 4 * hidden_dim)
    wih1 = u(ks[4], (4 * hidden_dim, hidden_dim), k_lstm).T
    whh1 = u(ks[5], (4 * hidden_dim, hidden_dim), k_lstm).T
    b1 = (u(ks[6], (4 * hidden_dim,), k_lstm)
          + u(ks[7], (4 * hidden_dim,), k_lstm)).reshape(1, 4 * hidden_dim)
    wlin = u(ks[8], (output_dim, hidden_dim), k_lin).T
    blin = u(ks[9], (output_dim,), k_lin).reshape(1, output_dim)

    return dict(wih0=jnp.asarray(wih0), whh0=jnp.asarray(whh0), b0=jnp.asarray(b0),
                wih1=jnp.asarray(wih1), whh1=jnp.asarray(whh1), b1=jnp.asarray(b1),
                wlin=jnp.asarray(wlin), blin=jnp.asarray(blin))


# --------------------------- Pure-JAX reference ------------------------------
def lstm_predictor_ref(x, params, hidden_dim, output_dim=1):
    n = x.shape[0]

    def cell(x_row, h, c, wih, whh, b):
        g = x_row @ wih + h @ whh + b
        i = jax.nn.sigmoid(g[:, :hidden_dim])
        f = jax.nn.sigmoid(g[:, hidden_dim:2 * hidden_dim])
        gg = jnp.tanh(g[:, 2 * hidden_dim:3 * hidden_dim])
        o = jax.nn.sigmoid(g[:, 3 * hidden_dim:])
        c = f * c + i * gg
        return o * jnp.tanh(c), c

    h0 = c0 = h1 = c1 = jnp.zeros((1, hidden_dim), jnp.float32)
    outs = []
    for t in range(n):
        xt = x[t:t + 1]
        h0, c0 = cell(xt, h0, c0, params["wih0"], params["whh0"], params["b0"])
        h1, c1 = cell(h0, h1, c1, params["wih1"], params["whh1"], params["b1"])
        outs.append(h1 @ params["wlin"] + params["blin"])
    out = jnp.concatenate(outs, axis=0)
    hs = jnp.stack([h0, h1], axis=0)
    cs = jnp.stack([c0, c1], axis=0)
    return out, hs, cs


# ---------------------------------- Main -------------------------------------
if __name__ == "__main__":
    input_dim, hidden_dim, output_dim, num_layers = 16, 32, 1, 2
    seq_len = 8  # the "batch" axis of the PyTorch module, acting as seq_len

    key = jax.random.PRNGKey(0)
    k_x, k_p = jax.random.split(key)
    x = jax.random.normal(k_x, (seq_len, input_dim), jnp.float32)
    params = init_params(k_p, input_dim, hidden_dim, output_dim)

    # One-time fused/interleaved/padded weight preparation (hoisted out of the
    # per-call path); the forward itself is jit-cached.
    prepared = prepare_params(params, hidden_dim, output_dim)

    out, h_state, c_state = lstm_predictor_forward(x, prepared, hidden_dim, output_dim)
    jax.block_until_ready((out, h_state, c_state))

    # Cross-check against a pure-JAX reference of the same math.
    out_r, h_r, c_r = lstm_predictor_ref(x, params, hidden_dim, output_dim)
    np.testing.assert_allclose(np.asarray(out), np.asarray(out_r), rtol=1e-4, atol=1e-5)
    np.testing.assert_allclose(np.asarray(h_state), np.asarray(h_r), rtol=1e-4, atol=1e-5)
    np.testing.assert_allclose(np.asarray(c_state), np.asarray(c_r), rtol=1e-4, atol=1e-5)

    assert out.shape == (seq_len, output_dim)
    assert h_state.shape == (num_layers, 1, hidden_dim)
    assert c_state.shape == (num_layers, 1, hidden_dim)
    print("KERNEL_OK")
</pallas_src>

<mosaic_0001>
module attributes {stable_mosaic.version = 11 : i64} {
  func.func @lstm_predictor_kernel(%arg0: memref<8x16xf32, #tpu.memory_space<vmem>>, %arg1: memref<16x256xf32, #tpu.memory_space<vmem>>, %arg2: memref<1x256xf32, #tpu.memory_space<vmem>>, %arg3: memref<64x256xf32, #tpu.memory_space<vmem>>, %arg4: memref<64x128xf32, #tpu.memory_space<vmem>>, %arg5: memref<1x128xf32, #tpu.memory_space<vmem>>, %arg6: memref<8x128xf32, #tpu.memory_space<vmem>>, %arg7: memref<1x64xf32, #tpu.memory_space<vmem>>, %arg8: memref<1x64xf32, #tpu.memory_space<vmem>>, %arg9: memref<8x256xf32, #tpu.memory_space<vmem>>, %arg10: memref<8x64xf32, #tpu.memory_space<vmem>>) attributes {dimension_semantics = [], scalar_prefetch = 0 : i64, scratch_operands = 2 : i64, tpu.core_type = #tpu.core_type<tc>} {
    %c0 = arith.constant 0 : index
    %c0_0 = arith.constant 0 : index
    %0 = vector.load %arg0[%c0, %c0_0] : memref<8x16xf32, #tpu.memory_space<vmem>>, vector<8x16xf32>
    %c0_1 = arith.constant 0 : index
    %c0_2 = arith.constant 0 : index
    %1 = vector.load %arg1[%c0_1, %c0_2] : memref<16x256xf32, #tpu.memory_space<vmem>>, vector<16x256xf32>
    %cst = arith.constant dense<0.000000e+00> : vector<8x256xf32>
    %2 = tpu.matmul %0, %1, %cst {dimension_numbers = #tpu.dot_dimension_numbers<[1], [0], [0], [1], [0, 0, 1, 1], [], []>} : vector<8x16xf32>, vector<16x256xf32>, vector<8x256xf32> -> vector<8x256xf32>
    %c0_3 = arith.constant 0 : index
    %c0_4 = arith.constant 0 : index
    %3 = vector.load %arg2[%c0_3, %c0_4] : memref<1x256xf32, #tpu.memory_space<vmem>>, vector<1x256xf32>
    %4 = vector.broadcast %3 : vector<1x256xf32> to vector<8x256xf32>
    %5 = arith.addf %2, %4 : vector<8x256xf32>
    %c0_5 = arith.constant 0 : index
    %c0_6 = arith.constant 0 : index
    %6 = vector.load %arg9[%c0_5, %c0_6] : memref<8x256xf32, #tpu.memory_space<vmem>>, vector<8x256xf32>
    tpu.vector_store %arg9[%c0_5, %c0_6], %5 {strides = array<i32>} : memref<8x256xf32, #tpu.memory_space<vmem>>, vector<8x256xf32>,
    %c0_7 = arith.constant 0 : index
    %c0_8 = arith.constant 0 : index
    %7 = vector.load %arg3[%c0_7, %c0_8] : memref<64x256xf32, #tpu.memory_space<vmem>>, vector<64x256xf32>
    %c0_9 = arith.constant 0 : index
    %c0_10 = arith.constant 0 : index
    %8 = vector.load %arg9[%c0_9, %c0_10] : memref<8x256xf32, #tpu.memory_space<vmem>>, vector<1x256xf32>
    %9 = vector.extract_strided_slice %8 {offsets = [0, 0], sizes = [1, 32], strides = [1, 1]} : vector<1x256xf32> to vector<1x32xf32>
    %10 = arith.negf %9 : vector<1x32xf32>
    %11 = math.exp %10 : vector<1x32xf32>
    %cst_11 = arith.constant 1.000000e+00 : f32
    %12 = vector.broadcast %cst_11 : f32 to vector<1x32xf32>
    %13 = arith.addf %12, %11 : vector<1x32xf32>
    %14 = arith.divf %12, %13 : vector<1x32xf32>
    %15 = vector.extract_strided_slice %8 {offsets = [0, 128], sizes = [1, 32], strides = [1, 1]} : vector<1x256xf32> to vector<1x32xf32>
    %16 = math.tanh %15 : vector<1x32xf32>
    %17 = vector.extract_strided_slice %8 {offsets = [0, 192], sizes = [1, 32], strides = [1, 1]} : vector<1x256xf32> to vector<1x32xf32>
    %18 = arith.negf %17 : vector<1x32xf32>
    %19 = math.exp %18 : vector<1x32xf32>
    %cst_12 = arith.constant 1.000000e+00 : f32
    %20 = vector.broadcast %cst_12 : f32 to vector<1x32xf32>
    %21 = arith.addf %20, %19 : vector<1x32xf32>
    %22 = arith.divf %20, %21 : vector<1x32xf32>
    %23 = arith.mulf %14, %16 : vector<1x32xf32>
    %24 = math.tanh %23 : vector<1x32xf32>
    %25 = arith.mulf %22, %24 : vector<1x32xf32>
    %cst_13 = arith.constant 0.000000e+00 : f32
    %26 = vector.broadcast %cst_13 : f32 to vector<1x32xf32>
    %27 = tpu.concatenate %25, %26 in 1 : vector<1x32xf32>, vector<1x32xf32> -> vector<1x64xf32>
    %28 = tpu.concatenate %23, %26 in 1 : vector<1x32xf32>, vector<1x32xf32> -> vector<1x64xf32>
    %c1_i32 = arith.constant 1 : i32
    %29 = arith.index_cast %c1_i32 : i32 to index
    %c0_14 = arith.constant 0 : index
    %30 = vector.load %arg9[%29, %c0_14] : memref<8x256xf32, #tpu.memory_space<vmem>>, vector<1x256xf32>
    %cst_15 = arith.constant dense<0.000000e+00> : vector<1x256xf32>
    %31 = tpu.matmul %27, %7, %cst_15 {dimension_numbers = #tpu.dot_dimension_numbers<[1], [0], [0], [1], [0, 0, 1, 1], [], []>} : vector<1x64xf32>, vector<64x256xf32>, vector<1x256xf32> -> vector<1x256xf32>
    %32 = arith.addf %30, %31 : vector<1x256xf32>
    %33 = arith.negf %32 : vector<1x256xf32>
    %34 = math.exp %33 : vector<1x256xf32>
    %cst_16 = arith.constant 1.000000e+00 : f32
    %35 = vector.broadcast %cst_16 : f32 to vector<1x256xf32>
    %36 = arith.addf %35, %34 : vector<1x256xf32>
    %37 = arith.divf %35, %36 : vector<1x256xf32>
    %38 = vector.extract_strided_slice %37 {offsets = [0, 0], sizes = [1, 64], strides = [1, 1]} : vector<1x256xf32> to vector<1x64xf32>
    %39 = vector.extract_strided_slice %37 {offsets = [0, 64], sizes = [1, 64], strides = [1, 1]} : vector<1x256xf32> to vector<1x64xf32>
    %40 = vector.extract_strided_slice %37 {offsets = [0, 192], sizes = [1, 64], strides = [1, 1]} : vector<1x256xf32> to vector<1x64xf32>
    %41 = vector.extract_strided_slice %32 {offsets = [0, 128], sizes = [1, 64], strides = [1, 1]} : vector<1x256xf32> to vector<1x64xf32>
    %42 = math.tanh %41 : vector<1x64xf32>
    %43 = arith.mulf %39, %28 : vector<1x64xf32>
    %44 = arith.mulf %38, %42 : vector<1x64xf32>
    %45 = arith.addf %43, %44 : vector<1x64xf32>
    %46 = math.tanh %45 : vector<1x64xf32>
    %47 = arith.mulf %40, %46 : vector<1x64xf32>
    %c1_i32_17 = arith.constant 1 : i32
    %48 = arith.subi %c1_i32, %c1_i32_17 : i32
    %49 = arith.index_cast %48 : i32 to index
    %c0_18 = arith.constant 0 : index
    %50 = vector.load %arg10[%49, %c0_18] : memref<8x64xf32, #tpu.memory_space<vmem>>, vector<1x64xf32>
    tpu.vector_store %arg10[%49, %c0_18], %47 {strides = array<i32>} : memref<8x64xf32, #tpu.memory_space<vmem>>, vector<1x64xf32>,
    %c2_i32 = arith.constant 2 : i32
    %51 = arith.index_cast %c2_i32 : i32 to index
    %c0_19 = arith.constant 0 : index
    %52 = vector.load %arg9[%51, %c0_19] : memref<8x256xf32, #tpu.memory_space<vmem>>, vector<1x256xf32>
    %cst_20 = arith.constant dense<0.000000e+00> : vector<1x256xf32>
    %53 = tpu.matmul %47, %7, %cst_20 {dimension_numbers = #tpu.dot_dimension_numbers<[1], [0], [0], [1], [0, 0, 1, 1], [], []>} : vector<1x64xf32>, vector<64x256xf32>, vector<1x256xf32> -> vector<1x256xf32>
    %54 = arith.addf %52, %53 : vector<1x256xf32>
    %55 = arith.negf %54 : vector<1x256xf32>
    %56 = math.exp %55 : vector<1x256xf32>
    %cst_21 = arith.constant 1.000000e+00 : f32
    %57 = vector.broadcast %cst_21 : f32 to vector<1x256xf32>
    %58 = arith.addf %57, %56 : vector<1x256xf32>
    %59 = arith.divf %57, %58 : vector<1x256xf32>
    %60 = vector.extract_strided_slice %59 {offsets = [0, 0], sizes = [1, 64], strides = [1, 1]} : vector<1x256xf32> to vector<1x64xf32>
    %61 = vector.extract_strided_slice %59 {offsets = [0, 64], sizes = [1, 64], strides = [1, 1]} : vector<1x256xf32> to vector<1x64xf32>
    %62 = vector.extract_strided_slice %59 {offsets = [0, 192], sizes = [1, 64], strides = [1, 1]} : vector<1x256xf32> to vector<1x64xf32>
    %63 = vector.extract_strided_slice %54 {offsets = [0, 128], sizes = [1, 64], strides = [1, 1]} : vector<1x256xf32> to vector<1x64xf32>
    %64 = math.tanh %63 : vector<1x64xf32>
    %65 = arith.mulf %61, %45 : vector<1x64xf32>
    %66 = arith.mulf %60, %64 : vector<1x64xf32>
    %67 = arith.addf %65, %66 : vector<1x64xf32>
    %68 = math.tanh %67 : vector<1x64xf32>
    %69 = arith.mulf %62, %68 : vector<1x64xf32>
    %c1_i32_22 = arith.constant 1 : i32
    %70 = arith.subi %c2_i32, %c1_i32_22 : i32
    %71 = arith.index_cast %70 : i32 to index
    %c0_23 = arith.constant 0 : index
    %72 = vector.load %arg10[%71, %c0_23] : memref<8x64xf32, #tpu.memory_space<vmem>>, vector<1x64xf32>
    tpu.vector_store %arg10[%71, %c0_23], %69 {strides = array<i32>} : memref<8x64xf32, #tpu.memory_space<vmem>>, vector<1x64xf32>,
    %c3_i32 = arith.constant 3 : i32
    %73 = arith.index_cast %c3_i32 : i32 to index
    %c0_24 = arith.constant 0 : index
    %74 = vector.load %arg9[%73, %c0_24] : memref<8x256xf32, #tpu.memory_space<vmem>>, vector<1x256xf32>
    %cst_25 = arith.constant dense<0.000000e+00> : vector<1x256xf32>
    %75 = tpu.matmul %69, %7, %cst_25 {dimension_numbers = #tpu.dot_dimension_numbers<[1], [0], [0], [1], [0, 0, 1, 1], [], []>} : vector<1x64xf32>, vector<64x256xf32>, vector<1x256xf32> -> vector<1x256xf32>
    %76 = arith.addf %74, %75 : vector<1x256xf32>
    %77 = arith.negf %76 : vector<1x256xf32>
    %78 = math.exp %77 : vector<1x256xf32>
    %cst_26 = arith.constant 1.000000e+00 : f32
    %79 = vector.broadcast %cst_26 : f32 to vector<1x256xf32>
    %80 = arith.addf %79, %78 : vector<1x256xf32>
    %81 = arith.divf %79, %80 : vector<1x256xf32>
    %82 = vector.extract_strided_slice %81 {offsets = [0, 0], sizes = [1, 64], strides = [1, 1]} : vector<1x256xf32> to vector<1x64xf32>
    %83 = vector.extract_strided_slice %81 {offsets = [0, 64], sizes = [1, 64], strides = [1, 1]} : vector<1x256xf32> to vector<1x64xf32>
    %84 = vector.extract_strided_slice %81 {offsets = [0, 192], sizes = [1, 64], strides = [1, 1]} : vector<1x256xf32> to vector<1x64xf32>
    %85 = vector.extract_strided_slice %76 {offsets = [0, 128], sizes = [1, 64], strides = [1, 1]} : vector<1x256xf32> to vector<1x64xf32>
    %86 = math.tanh %85 : vector<1x64xf32>
    %87 = arith.mulf %83, %67 : vector<1x64xf32>
    %88 = arith.mulf %82, %86 : vector<1x64xf32>
    %89 = arith.addf %87, %88 : vector<1x64xf32>
    %90 = math.tanh %89 : vector<1x64xf32>
    %91 = arith.mulf %84, %90 : vector<1x64xf32>
    %c1_i32_27 = arith.constant 1 : i32
    %92 = arith.subi %c3_i32, %c1_i32_27 : i32
    %93 = arith.index_cast %92 : i32 to index
    %c0_28 = arith.constant 0 : index
    %94 = vector.load %arg10[%93, %c0_28] : memref<8x64xf32, #tpu.memory_space<vmem>>, vector<1x64xf32>
    tpu.vector_store %arg10[%93, %c0_28], %91 {strides = array<i32>} : memref<8x64xf32, #tpu.memory_space<vmem>>, vector<1x64xf32>,
    %c4_i32 = arith.constant 4 : i32
    %95 = arith.index_cast %c4_i32 : i32 to index
    %c0_29 = arith.constant 0 : index
    %96 = vector.load %arg9[%95, %c0_29] : memref<8x256xf32, #tpu.memory_space<vmem>>, vector<1x256xf32>
    %cst_30 = arith.constant dense<0.000000e+00> : vector<1x256xf32>
    %97 = tpu.matmul %91, %7, %cst_30 {dimension_numbers = #tpu.dot_dimension_numbers<[1], [0], [0], [1], [0, 0, 1, 1], [], []>} : vector<1x64xf32>, vector<64x256xf32>, vector<1x256xf32> -> vector<1x256xf32>
    %98 = arith.addf %96, %97 : vector<1x256xf32>
    %99 = arith.negf %98 : vector<1x256xf32>
    %100 = math.exp %99 : vector<1x256xf32>
    %cst_31 = arith.constant 1.000000e+00 : f32
    %101 = vector.broadcast %cst_31 : f32 to vector<1x256xf32>
    %102 = arith.addf %101, %100 : vector<1x256xf32>
    %103 = arith.divf %101, %102 : vector<1x256xf32>
    %104 = vector.extract_strided_slice %103 {offsets = [0, 0], sizes = [1, 64], strides = [1, 1]} : vector<1x256xf32> to vector<1x64xf32>
    %105 = vector.extract_strided_slice %103 {offsets = [0, 64], sizes = [1, 64], strides = [1, 1]} : vector<1x256xf32> to vector<1x64xf32>
    %106 = vector.extract_strided_slice %103 {offsets = [0, 192], sizes = [1, 64], strides = [1, 1]} : vector<1x256xf32> to vector<1x64xf32>
    %107 = vector.extract_strided_slice %98 {offsets = [0, 128], sizes = [1, 64], strides = [1, 1]} : vector<1x256xf32> to vector<1x64xf32>
    %108 = math.tanh %107 : vector<1x64xf32>
    %109 = arith.mulf %105, %89 : vector<1x64xf32>
    %110 = arith.mulf %104, %108 : vector<1x64xf32>
    %111 = arith.addf %109, %110 : vector<1x64xf32>
    %112 = math.tanh %111 : vector<1x64xf32>
    %113 = arith.mulf %106, %112 : vector<1x64xf32>
    %c1_i32_32 = arith.constant 1 : i32
    %114 = arith.subi %c4_i32, %c1_i32_32 : i32
    %115 = arith.index_cast %114 : i32 to index
    %c0_33 = arith.constant 0 : index
    %116 = vector.load %arg10[%115, %c0_33] : memref<8x64xf32, #tpu.memory_space<vmem>>, vector<1x64xf32>
    tpu.vector_store %arg10[%115, %c0_33], %113 {strides = array<i32>} : memref<8x64xf32, #tpu.memory_space<vmem>>, vector<1x64xf32>,
    %c5_i32 = arith.constant 5 : i32
    %117 = arith.index_cast %c5_i32 : i32 to index
    %c0_34 = arith.constant 0 : index
    %118 = vector.load %arg9[%117, %c0_34] : memref<8x256xf32, #tpu.memory_space<vmem>>, vector<1x256xf32>
    %cst_35 = arith.constant dense<0.000000e+00> : vector<1x256xf32>
    %119 = tpu.matmul %113, %7, %cst_35 {dimension_numbers = #tpu.dot_dimension_numbers<[1], [0], [0], [1], [0, 0, 1, 1], [], []>} : vector<1x64xf32>, vector<64x256xf32>, vector<1x256xf32> -> vector<1x256xf32>
    %120 = arith.addf %118, %119 : vector<1x256xf32>
    %121 = arith.negf %120 : vector<1x256xf32>
    %122 = math.exp %121 : vector<1x256xf32>
    %cst_36 = arith.constant 1.000000e+00 : f32
    %123 = vector.broadcast %cst_36 : f32 to vector<1x256xf32>
    %124 = arith.addf %123, %122 : vector<1x256xf32>
    %125 = arith.divf %123, %124 : vector<1x256xf32>
    %126 = vector.extract_strided_slice %125 {offsets = [0, 0], sizes = [1, 64], strides = [1, 1]} : vector<1x256xf32> to vector<1x64xf32>
    %127 = vector.extract_strided_slice %125 {offsets = [0, 64], sizes = [1, 64], strides = [1, 1]} : vector<1x256xf32> to vector<1x64xf32>
    %128 = vector.extract_strided_slice %125 {offsets = [0, 192], sizes = [1, 64], strides = [1, 1]} : vector<1x256xf32> to vector<1x64xf32>
    %129 = vector.extract_strided_slice %120 {offsets = [0, 128], sizes = [1, 64], strides = [1, 1]} : vector<1x256xf32> to vector<1x64xf32>
    %130 = math.tanh %129 : vector<1x64xf32>
    %131 = arith.mulf %127, %111 : vector<1x64xf32>
    %132 = arith.mulf %126, %130 : vector<1x64xf32>
    %133 = arith.addf %131, %132 : vector<1x64xf32>
    %134 = math.tanh %133 : vector<1x64xf32>
    %135 = arith.mulf %128, %134 : vector<1x64xf32>
    %c1_i32_37 = arith.constant 1 : i32
    %136 = arith.subi %c5_i32, %c1_i32_37 : i32
    %137 = arith.index_cast %136 : i32 to index
    %c0_38 = arith.constant 0 : index
    %138 = vector.load %arg10[%137, %c0_38] : memref<8x64xf32, #tpu.memory_space<vmem>>, vector<1x64xf32>
    tpu.vector_store %arg10[%137, %c0_38], %135 {strides = array<i32>} : memref<8x64xf32, #tpu.memory_space<vmem>>, vector<1x64xf32>,
    %c6_i32 = arith.constant 6 : i32
    %139 = arith.index_cast %c6_i32 : i32 to index
    %c0_39 = arith.constant 0 : index
    %140 = vector.load %arg9[%139, %c0_39] : memref<8x256xf32, #tpu.memory_space<vmem>>, vector<1x256xf32>
    %cst_40 = arith.constant dense<0.000000e+00> : vector<1x256xf32>
    %141 = tpu.matmul %135, %7, %cst_40 {dimension_numbers = #tpu.dot_dimension_numbers<[1], [0], [0], [1], [0, 0, 1, 1], [], []>} : vector<1x64xf32>, vector<64x256xf32>, vector<1x256xf32> -> vector<1x256xf32>
    %142 = arith.addf %140, %141 : vector<1x256xf32>
    %143 = arith.negf %142 : vector<1x256xf32>
    %144 = math.exp %143 : vector<1x256xf32>
    %cst_41 = arith.constant 1.000000e+00 : f32
    %145 = vector.broadcast %cst_41 : f32 to vector<1x256xf32>
    %146 = arith.addf %145, %144 : vector<1x256xf32>
    %147 = arith.divf %145, %146 : vector<1x256xf32>
    %148 = vector.extract_strided_slice %147 {offsets = [0, 0], sizes = [1, 64], strides = [1, 1]} : vector<1x256xf32> to vector<1x64xf32>
    %149 = vector.extract_strided_slice %147 {offsets = [0, 64], sizes = [1, 64], strides = [1, 1]} : vector<1x256xf32> to vector<1x64xf32>
    %150 = vector.extract_strided_slice %147 {offsets = [0, 192], sizes = [1, 64], strides = [1, 1]} : vector<1x256xf32> to vector<1x64xf32>
    %151 = vector.extract_strided_slice %142 {offsets = [0, 128], sizes = [1, 64], strides = [1, 1]} : vector<1x256xf32> to vector<1x64xf32>
    %152 = math.tanh %151 : vector<1x64xf32>
    %153 = arith.mulf %149, %133 : vector<1x64xf32>
    %154 = arith.mulf %148, %152 : vector<1x64xf32>
    %155 = arith.addf %153, %154 : vector<1x64xf32>
    %156 = math.tanh %155 : vector<1x64xf32>
    %157 = arith.mulf %150, %156 : vector<1x64xf32>
    %c1_i32_42 = arith.constant 1 : i32
    %158 = arith.subi %c6_i32, %c1_i32_42 : i32
    %159 = arith.index_cast %158 : i32 to index
    %c0_43 = arith.constant 0 : index
    %160 = vector.load %arg10[%159, %c0_43] : memref<8x64xf32, #tpu.memory_space<vmem>>, vector<1x64xf32>
    tpu.vector_store %arg10[%159, %c0_43], %157 {strides = array<i32>} : memref<8x64xf32, #tpu.memory_space<vmem>>, vector<1x64xf32>,
    %c7_i32 = arith.constant 7 : i32
    %161 = arith.index_cast %c7_i32 : i32 to index
    %c0_44 = arith.constant 0 : index
    %162 = vector.load %arg9[%161, %c0_44] : memref<8x256xf32, #tpu.memory_space<vmem>>, vector<1x256xf32>
    %cst_45 = arith.constant dense<0.000000e+00> : vector<1x256xf32>
    %163 = tpu.matmul %157, %7, %cst_45 {dimension_numbers = #tpu.dot_dimension_numbers<[1], [0], [0], [1], [0, 0, 1, 1], [], []>} : vector<1x64xf32>, vector<64x256xf32>, vector<1x256xf32> -> vector<1x256xf32>
    %164 = arith.addf %162, %163 : vector<1x256xf32>
    %165 = arith.negf %164 : vector<1x256xf32>
    %166 = math.exp %165 : vector<1x256xf32>
    %cst_46 = arith.constant 1.000000e+00 : f32
    %167 = vector.broadcast %cst_46 : f32 to vector<1x256xf32>
    %168 = arith.addf %167, %166 : vector<1x256xf32>
    %169 = arith.divf %167, %168 : vector<1x256xf32>
    %170 = vector.extract_strided_slice %169 {offsets = [0, 0], sizes = [1, 64], strides = [1, 1]} : vector<1x256xf32> to vector<1x64xf32>
    %171 = vector.extract_strided_slice %169 {offsets = [0, 64], sizes = [1, 64], strides = [1, 1]} : vector<1x256xf32> to vector<1x64xf32>
    %172 = vector.extract_strided_slice %169 {offsets = [0, 192], sizes = [1, 64], strides = [1, 1]} : vector<1x256xf32> to vector<1x64xf32>
    %173 = vector.extract_strided_slice %164 {offsets = [0, 128], sizes = [1, 64], strides = [1, 1]} : vector<1x256xf32> to vector<1x64xf32>
    %174 = math.tanh %173 : vector<1x64xf32>
    %175 = arith.mulf %171, %155 : vector<1x64xf32>
    %176 = arith.mulf %170, %174 : vector<1x64xf32>
    %177 = arith.addf %175, %176 : vector<1x64xf32>
    %178 = math.tanh %177 : vector<1x64xf32>
    %179 = arith.mulf %172, %178 : vector<1x64xf32>
    %c1_i32_47 = arith.constant 1 : i32
    %180 = arith.subi %c7_i32, %c1_i32_47 : i32
    %181 = arith.index_cast %180 : i32 to index
    %c0_48 = arith.constant 0 : index
    %182 = vector.load %arg10[%181, %c0_48] : memref<8x64xf32, #tpu.memory_space<vmem>>, vector<1x64xf32>
    tpu.vector_store %arg10[%181, %c0_48], %179 {strides = array<i32>} : memref<8x64xf32, #tpu.memory_space<vmem>>, vector<1x64xf32>,
    %c7_i32_49 = arith.constant 7 : i32
    %cst_50 = arith.constant dense<0.000000e+00> : vector<1x256xf32>
    %183 = tpu.matmul %179, %7, %cst_50 {dimension_numbers = #tpu.dot_dimension_numbers<[1], [0], [0], [1], [0, 0, 1, 1], [], []>} : vector<1x64xf32>, vector<64x256xf32>, vector<1x256xf32> -> vector<1x256xf32>
    %c0_51 = arith.constant 0 : index
    %c0_52 = arith.constant 0 : index
    %184 = vector.load %arg2[%c0_51, %c0_52] : memref<1x256xf32, #tpu.memory_space<vmem>>, vector<1x256xf32>
    %185 = arith.addf %183, %184 : vector<1x256xf32>
    %186 = arith.negf %185 : vector<1x256xf32>
    %187 = math.exp %186 : vector<1x256xf32>
    %cst_53 = arith.constant 1.000000e+00 : f32
    %188 = vector.broadcast %cst_53 : f32 to vector<1x256xf32>
    %189 = arith.addf %188, %187 : vector<1x256xf32>
    %190 = arith.divf %188, %189 : vector<1x256xf32>
    %191 = vector.extract_strided_slice %190 {offsets = [0, 0], sizes = [1, 64], strides = [1, 1]} : vector<1x256xf32> to vector<1x64xf32>
    %192 = vector.extract_strided_slice %190 {offsets = [0, 64], sizes = [1, 64], strides = [1, 1]} : vector<1x256xf32> to vector<1x64xf32>
    %193 = vector.extract_strided_slice %190 {offsets = [0, 192], sizes = [1, 64], strides = [1, 1]} : vector<1x256xf32> to vector<1x64xf32>
    %194 = vector.extract_strided_slice %185 {offsets = [0, 128], sizes = [1, 64], strides = [1, 1]} : vector<1x256xf32> to vector<1x64xf32>
    %195 = math.tanh %194 : vector<1x64xf32>
    %196 = arith.mulf %192, %177 : vector<1x64xf32>
    %197 = arith.mulf %191, %195 : vector<1x64xf32>
    %198 = arith.addf %196, %197 : vector<1x64xf32>
    %199 = math.tanh %198 : vector<1x64xf32>
    %200 = arith.mulf %193, %199 : vector<1x64xf32>
    %c7 = arith.constant 7 : index
    %c0_54 = arith.constant 0 : index
    %201 = vector.load %arg10[%c7, %c0_54] : memref<8x64xf32, #tpu.memory_space<vmem>>, vector<1x64xf32>
    tpu.vector_store %arg10[%c7, %c0_54], %200 {strides = array<i32>} : memref<8x64xf32, #tpu.memory_space<vmem>>, vector<1x64xf32>,
    %c0_55 = arith.constant 0 : index
    %c0_56 = arith.constant 0 : index
    %202 = vector.load %arg10[%c0_55, %c0_56] : memref<8x64xf32, #tpu.memory_space<vmem>>, vector<8x64xf32>
    %c0_57 = arith.constant 0 : index
    %c0_58 = arith.constant 0 : index
    %203 = vector.load %arg4[%c0_57, %c0_58] : memref<64x128xf32, #tpu.memory_space<vmem>>, vector<64x128xf32>
    %cst_59 = arith.constant dense<0.000000e+00> : vector<8x128xf32>
    %204 = tpu.matmul %202, %203, %cst_59 {dimension_numbers = #tpu.dot_dimension_numbers<[1], [0], [0], [1], [0, 0, 1, 1], [], []>} : vector<8x64xf32>, vector<64x128xf32>, vector<8x128xf32> -> vector<8x128xf32>
    %c0_60 = arith.constant 0 : index
    %c0_61 = arith.constant 0 : index
    %205 = vector.load %arg5[%c0_60, %c0_61] : memref<1x128xf32, #tpu.memory_space<vmem>>, vector<1x128xf32>
    %206 = vector.broadcast %205 : vector<1x128xf32> to vector<8x128xf32>
    %207 = arith.addf %204, %206 : vector<8x128xf32>
    %c0_62 = arith.constant 0 : index
    %c0_63 = arith.constant 0 : index
    %208 = vector.load %arg6[%c0_62, %c0_63] : memref<8x128xf32, #tpu.memory_space<vmem>>, vector<8x128xf32>
    tpu.vector_store %arg6[%c0_62, %c0_63], %207 {strides = array<i32>} : memref<8x128xf32, #tpu.memory_space<vmem>>, vector<8x128xf32>,
    %209 = vector.extract_strided_slice %179 {offsets = [0, 0], sizes = [1, 32], strides = [1, 1]} : vector<1x64xf32> to vector<1x32xf32>
    %210 = vector.extract_strided_slice %200 {offsets = [0, 32], sizes = [1, 32], strides = [1, 1]} : vector<1x64xf32> to vector<1x32xf32>
    %211 = tpu.concatenate %209, %210 in 1 : vector<1x32xf32>, vector<1x32xf32> -> vector<1x64xf32>
    %c0_64 = arith.constant 0 : index
    %c0_65 = arith.constant 0 : index
    %212 = vector.load %arg7[%c0_64, %c0_65] : memref<1x64xf32, #tpu.memory_space<vmem>>, vector<1x64xf32>
    tpu.vector_store %arg7[%c0_64, %c0_65], %211 {strides = array<i32>} : memref<1x64xf32, #tpu.memory_space<vmem>>, vector<1x64xf32>,
    %213 = vector.extract_strided_slice %177 {offsets = [0, 0], sizes = [1, 32], strides = [1, 1]} : vector<1x64xf32> to vector<1x32xf32>
    %214 = vector.extract_strided_slice %198 {offsets = [0, 32], sizes = [1, 32], strides = [1, 1]} : vector<1x64xf32> to vector<1x32xf32>
    %215 = tpu.concatenate %213, %214 in 1 : vector<1x32xf32>, vector<1x32xf32> -> vector<1x64xf32>
    %c0_66 = arith.constant 0 : index
    %c0_67 = arith.constant 0 : index
    %216 = vector.load %arg8[%c0_66, %c0_67] : memref<1x64xf32, #tpu.memory_space<vmem>>, vector<1x64xf32>
    tpu.vector_store %arg8[%c0_66, %c0_67], %215 {strides = array<i32>} : memref<1x64xf32, #tpu.memory_space<vmem>>, vector<1x64xf32>,
    return
  }
}

</mosaic_0001>

<bundles_post_ra>
// kernel: lstm_predictor_forward.1
= control target key start
LH: loop header
LB: loop body
LE: loop exit
PB: predicated region body
PF: predicated region fallthrough
CT: control target
= control target key end

     0   :  { %14 = vsyncpa [#allocation5], 0  ;;  %s2022_s0 = inlined_call_operand.vmem [shape: f32[8,16], index: 0, kind: input, shape index: {}]   ;;  %s2023_s1 = inlined_call_operand.hbm [shape: f32[16,256], index: 1, kind: input, shape index: {}]   ;;  %s2024_s2 = inlined_call_operand.vmem [shape: f32[1,256], index: 2, kind: input, shape index: {}]   ;;  %s2025_s3 = inlined_call_operand.hbm [shape: f32[64,256], index: 3, kind: input, shape index: {}]   ;;  %s2026_s4 = inlined_call_operand.hbm [shape: f32[64,128], index: 4, kind: input, shape index: {}]   ;;  %s2027_s5 = inlined_call_operand.hbm [shape: f32[1,128], index: 5, kind: input, shape index: {}]   ;;  %s2028_s6 = inlined_call_operand.vmem [shape: f32[8,128], index: 6, kind: output, shape index: {0}]   ;;  %s2029_s7 = inlined_call_operand.vmem [shape: f32[1,64], index: 7, kind: output, shape index: {1}]   ;;  %s2030_s8 = inlined_call_operand.vmem [shape: f32[1,64], index: 8, kind: output, shape index: {2}]  }
   0x1   :  { %15 = vsyncpa [#allocation7], 0 }
   0x2   :  { %16 = vsyncpa [#allocation10], 0  ;;  %s1719_s27 = smov [#allocation6]   ;;  %s1720_s29 = smov [#allocation4]  }
   0x3   :  { %s38_s28 = sshll.u32 %s1719_s27, 4  ;;  %s24_s30 = sshll.u32 %s1720_s29, 4  ;;  %s39_s28 = int_to_ptr.vmem [resolvable:$true] %s38_s28  ;;  %s1777_s30 = int_to_ptr.vmem [resolvable:$true] %s24_s30 }
   0x4   :  { %s1625_s11 = scalar_lea.hbm %s2025_s3, 2048 }
   0x5   :  { %p1626_p0 = scmp.ne.s32.totalorder %s2025_s3, %s1625_s11  ;;  %p1629_p1 = scmp.lt.u32.totalorder %s1625_s11, %s2025_s3 }
   0x7   :  { %p1631_p2 = pnand %p1629_p1, %p1626_p0 }
   0x9   :  { %1634 = shalt.err (!%p1631_p2)
}
   0xa   :  { %s1635_s16 = scalar_lea.vmem %s39_s28, 2048  ;;  %p1640_p4 = scmp.lt.s32.totalorder %s39_s28, %s39_s28 }
   0xb   :  { %p1636_p3 = scmp.ne.s32.totalorder %s39_s28, %s1635_s16  ;;  %p1641_p5 = scmp.lt.s32.totalorder %s1635_s16, %s1635_s16 }
   0xd   :  { %p1642_p6 = por %p1641_p5, %p1640_p4 }
   0xf   :  { %p1643_p7 = pnand %p1642_p6, %p1636_p3 }
  0x11   :  { %1646 = shalt.err (!%p1643_p7)
}
  0x12   :  { %s1721_s17 = smov 256   ;;  %s1722_s18 = smov 16  }
  0x13   :  { %44 = dma.hbm_to_vmem [thread:$0]  %s2025_s3, 2048, %s39_s28, [#allocation7], %s1721_s17, %s1721_s17, %s1722_s18  }
  0x14   :  { %s1647_s23 = scalar_lea.hbm %s2023_s1, 512 }
  0x15   :  { %p1648_p8 = scmp.ne.s32.totalorder %s2023_s1, %s1647_s23  ;;  %p1651_p9 = scmp.lt.u32.totalorder %s1647_s23, %s2023_s1 }
  0x17   :  { %p1653_p10 = pnand %p1651_p9, %p1648_p8 }
  0x19   :  { %1656 = shalt.err (!%p1653_p10)
}
  0x1a   :  { %s1657_s29 = scalar_lea.vmem %s1777_s30, 512  ;;  %p1662_p12 = scmp.lt.s32.totalorder %s1777_s30, %s1777_s30 }
  0x1b   :  { %p1658_p11 = scmp.ne.s32.totalorder %s1777_s30, %s1657_s29  ;;  %p1663_p13 = scmp.lt.s32.totalorder %s1657_s29, %s1657_s29 }
  0x1d   :  { %p1664_p0 = por %p1663_p13, %p1662_p12 }
  0x1f   :  { %p1665_p1 = pnand %p1664_p0, %p1658_p11 }
  0x21   :  { %1668 = shalt.err (!%p1665_p1)
}
  0x22   :  { %30 = dma.hbm_to_vmem [thread:$0]  %s2023_s1, 512, %s1777_s30, [#allocation5], %s1721_s17, %s1721_s17, %s1722_s18  }
  0x23   :  { %s1723_s9 = smov [#allocation8]   ;;  %s1669_s13 = scalar_lea.hbm %s2026_s4, 1024 }
  0x24   :  { %s50_s10 = sshll.u32 %s1723_s9, 4  ;;  %p1670_p2 = scmp.ne.s32.totalorder %s2026_s4, %s1669_s13  ;;  %s51_s10 = int_to_ptr.vmem [resolvable:$true] %s50_s10 }
  0x25   :  { %p1673_p3 = scmp.lt.u32.totalorder %s1669_s13, %s2026_s4 }
  0x27   :  { %p1675_p4 = pnand %p1673_p3, %p1670_p2 }
  0x29   :  { %1678 = shalt.err (!%p1675_p4)
}
  0x2a   :  { %s1679_s20 = scalar_lea.vmem %s51_s10, 1024  ;;  %p1684_p6 = scmp.lt.s32.totalorder %s51_s10, %s51_s10 }
  0x2b   :  { %p1680_p5 = scmp.ne.s32.totalorder %s51_s10, %s1679_s20  ;;  %p1685_p7 = scmp.lt.s32.totalorder %s1679_s20, %s1679_s20 }
  0x2d   :  { %p1686_p8 = por %p1685_p7, %p1684_p6 }
  0x2f   :  { %p1687_p9 = pnand %p1686_p8, %p1680_p5 }
  0x31   :  { %1690 = shalt.err (!%p1687_p9)
}
  0x32   :  { %s1724_s1 = smov 128   ;;  %s1725_s30 = smov 8  }
  0x33   :  { %56 = dma.hbm_to_vmem [thread:$0]  %s2026_s4, 1024, %s51_s10, [#allocation7], %s1724_s1, %s1724_s1, %s1725_s30  }
  0x34   :  { %s1726_s21 = smov [#allocation9]   ;;  %s1691_s25 = scalar_lea.hbm %s2027_s5, 16 }
  0x35   :  { %s63_s22 = sshll.u32 %s1726_s21, 4  ;;  %p1692_p10 = scmp.ne.s32.totalorder %s2027_s5, %s1691_s25  ;;  %s64_s22 = int_to_ptr.vmem [resolvable:$true] %s63_s22 }
  0x36   :  { %p1695_p11 = scmp.lt.u32.totalorder %s1691_s25, %s2027_s5 }
  0x38   :  { %p1697_p12 = pnand %p1695_p11, %p1692_p10 }
  0x3a   :  { %1700 = shalt.err (!%p1697_p12)
}
  0x3b   :  { %s1701_s28 = scalar_lea.vmem %s64_s22, 16  ;;  %s1705_s4 = scalar_lea.vmem %s64_s22, 32 }
  0x3c   :  { %p1702_p13 = scmp.ne.s32.totalorder %s64_s22, %s1701_s28  ;;  %p1706_p0 = scmp.lt.s32.totalorder %s64_s22, %s64_s22 }
  0x3d   :  { %p1707_p1 = scmp.lt.s32.totalorder %s1705_s4, %s1701_s28 }
  0x3f   :  { %p1708_p2 = por %p1707_p1, %p1706_p0 }
  0x41   :  { %p1709_p3 = pnand %p1708_p2, %p1702_p13 }
  0x43   :  { %1712 = shalt.err (!%p1709_p3)
}
  0x44   :  { %66 = dma.hbm_to_vmem [thread:$0]  %s2027_s5, 16, %s64_s22, [#allocation10]  }
  0x45   :  { %1713 = dma.done.wait [#allocation5], 512  }
  0x46   :  { %1714 = vsyncadd [#allocation5], 4294966784 }
  0x47   :  { %1715 = dma.done.wait [#allocation7], 3072  }
  0x48   :  { %1716 = vsyncadd [#allocation7], 4294964224 }
  0x49   :  { %1717 = dma.done.wait [#allocation10], 16  }
  0x4a   :  { %1718 = vsyncadd [#allocation10], 4294967280  ;;  %v1727_v0 = vmov 0.0   ;;  %v81_v1 = vld [vmem:[#allocation4 + $0x8] sm:$0xff]  ;;  %v83_v2 = vld [vmem:[#allocation4 + $0x18] sm:$0xff]  ;;  %vm96_vm0 = vcmask 130048   ;;  %v86_v8 = vlaneseq }
  0x4b   :  { %164 = vmatprep.mubr.f32.mxu0 %v1727_v0  ;;  %286 = vmatprep.mubr.f32.mxu1 %v1727_v0  ;;  %v80_v3 = vld [vmem:[#allocation4] sm:$0xff]  ;;  %v1388_v4 = vpack.c.bf16 %v83_v2, %v81_v1  ;;  %v82_v5 = vld [vmem:[#allocation4 + $0x10] sm:$0xff]  ;;  %v79_v7 = vld [vmem:[%s2022_s0] sm:$0xff]  ;;  %s1728_s0 = smov 64   ;;  %v1729_v48 = vmov 1966171168  }
  0x4c   :  { %v1390_v6 = vpack.c.bf16 %v82_v5, %v80_v3  ;;  %v1838_v9 = vshrl.u32 %v86_v8, 7  ;;  %v84_v11 = vld [vmem:[%s2024_s2] sm:$0x3]  ;;  %v176_v22 = vld [vmem:[#allocation6 + $0x18] sm:$0xff]  ;;  %v173_v24 = vld [vmem:[#allocation6] sm:$0xff]  ;;  %v297_v49 = vunpack.c.l.s4 %v1729_v48  ;;  %vm213_vm1 = vcmask 261120  }
  0x4d   :  { %1389 = vmatprep.subr.bf16.mxu0 %v1388_v4  ;;  %v174_v21 = vld [vmem:[#allocation6 + $0x8] sm:$0xff]  ;;  %v175_v25 = vld [vmem:[#allocation6 + $0x10] sm:$0xff]  ;;  %v180_v28 = vld [vmem:[#allocation6 + $0x38] sm:$0xff]  ;;  %vm218_vm2 = vcmask 523264   ;;  %vm358_vm3 = vcmask 516096   ;;  %vm1731_vm4 = vmmov 0  }
  0x4e   :  { %1391 = vmatpush1.bf16.msra.mxu0 %v1390_v6  ;;  %v1841_v10 = vsub.s32 0, %v1838_v9  ;;  %v92_v12 = vsub.s32 1, %v1838_v9  ;;  %v1851_v23 = vpack.c.bf16 %v176_v22, %v174_v21  ;;  %v1853_v26 = vpack.c.bf16 %v175_v25, %v173_v24  ;;  %v178_v27 = vld [vmem:[#allocation6 + $0x28] sm:$0xff]  ;;  %v177_v29 = vld [vmem:[#allocation6 + $0x20] sm:$0xff]  ;;  %v179_v31 = vld [vmem:[#allocation6 + $0x30] sm:$0xff] }
  0x4f   :  { %v1859_v30 = vpack.c.bf16 %v180_v28, %v178_v27  ;;  %v182_v32 = vld [vmem:[#allocation6 + $0x48] sm:$0xff]  ;;  %v184_v33 = vld [vmem:[#allocation6 + $0x58] sm:$0xff]  ;;  %v1861_v34 = vpack.c.bf16 %v179_v31, %v177_v29  ;;  %v181_v36 = vld [vmem:[#allocation6 + $0x40] sm:$0xff]  ;;  %v298_v50 = vunpack.c.0.s8 %v297_v49 }
  0x50   :  { %v89_v13 = vrot.slane %v84_v11, %v1841_v10  ;;  %v93_v14 = vrot.slane %v84_v11, %v92_v12  ;;  %1393 = vmatprep.subr.bf16.mxu1 %v1851_v23  ;;  %1409 = vmatprep.subr.bf16.mxu0 %v1851_v23  ;;  %v1863_v35 = vpack.c.bf16 %v184_v33, %v182_v32  ;;  %v183_v37 = vld [vmem:[#allocation6 + $0x50] sm:$0xff]  ;;  %v186_v38 = vld [vmem:[#allocation6 + $0x68] sm:$0xff]  ;;  %v188_v39 = vld [vmem:[#allocation6 + $0x78] sm:$0xff] }
  0x51   :  { %1338 = vmatmul.mubr.msk.f32.vlgmr.msra.gmra.mrb[0].mxu0 %vm96_vm0, %v79_v7  ;;  %1395 = vmatpush1.bf16.msra.mxu1 %v1853_v26  ;;  %v1868_v40 = vpack.c.bf16 %v183_v37, %v181_v36  ;;  %v1872_v41 = vpack.c.bf16 %v188_v39, %v186_v38  ;;  %v185_v42 = vld [vmem:[#allocation6 + $0x60] sm:$0xff]  ;;  %v187_v43 = vld [vmem:[#allocation6 + $0x70] sm:$0xff]  ;;  %v1886_v53 = vsub.s32 %v298_v50, %v1838_v9 }
  0x52   :  { %429 = vmatprep.mubr.f32.mxu0 %v1727_v0  ;;  %1411 = vmatpush1.bf16.msra.mxu0 %v1853_v26  ;;  %v1876_v46 = vpack.c.bf16 %v187_v43, %v185_v42 }
  0x53   :  { %1397 = vmatprep.subr.bf16.mxu1 %v1859_v30  ;;  %1413 = vmatprep.subr.bf16.mxu0 %v1859_v30 }
  0x55   :  { %1399 = vmatpush1.bf16.msra.mxu1 %v1861_v34 }
  0x56   :  { %1415 = vmatpush1.bf16.msra.mxu0 %v1861_v34  ;;  %1401 = vmatprep.subr.bf16.mxu1 %v1863_v35 }
  0x57   :  { %1417 = vmatprep.subr.bf16.mxu0 %v1863_v35 }
  0x59   :  { %1403 = vmatpush1.bf16.msra.mxu1 %v1868_v40 }
  0x5a   :  { %1419 = vmatpush1.bf16.msra.mxu0 %v1868_v40  ;;  %1405 = vmatprep.subr.bf16.mxu1 %v1872_v41 }
  0x5b   :  { %1421 = vmatprep.subr.bf16.mxu0 %v1872_v41 }
  0x5d   :  { %1407 = vmatpush1.bf16.msra.mxu1 %v1876_v46 }
  0x5e   :  { %1423 = vmatpush1.bf16.msra.mxu0 %v1876_v46  ;;  %1425 = vmatprep.subr.bf16.mxu1 %v1851_v23 }
  0x5f   :  { %1441 = vmatprep.subr.bf16.mxu0 %v1851_v23 }
 0x124   :  { %v166_v15 = vpop.f32.mrb[0].mxu0 }
 0x125   :  { %v167_v16 = vadd.f32 %v166_v15, %v89_v13  ;;  %v168_v17 = vpop.f32.mrb[1].mxu0 }
 0x126   :  { %v169_v18 = vadd.f32 %v168_v17, %v93_v14 }
 0x127   :  { %171 = vst [vmem:[#allocation2] sm:$0xff] %v167_v16 }
 0x128   :  { %172 = vst [vmem:[#allocation2 + $0x8] sm:$0xff] %v169_v18 }
 0x12f   :  { %v189_v19 = vld [vmem:[#allocation2] ss:$8 sm:$0x3]  ;;  %v217_v11 = vld [vmem:[#allocation2 + $0x1] ss:$8 sm:$0x3] }
 0x130   :  { %200 = vrot.lane.b32.xlu0 %v189_v19, %s1728_s0  ;;  %v1339_v20 = vmul.f32 -1.442695, %v189_v19  ;;  %v197_v44 = vrot.slane %v189_v19, 1  ;;  %v361_v42 = vld [vmem:[#allocation2 + $0x2] ss:$8 sm:$0x3] }
 0x132   :  { %1545 = vpow2.f32 %v1339_v20 }
 0x133   :  { %1547 = vtanh.f32 %v197_v44 }
 0x13c   :  { %v1546_v45 = vpop.eup %1545 }
 0x13d   :  { %v193_v47 = vadd.f32 1.0, %v1546_v45  ;;  %v1548_v51 = vpop.eup %1547 }
 0x13f   :  { %1549 = vrcp.f32 %v193_v47 }
 0x149   :  { %v1550_v52 = vpop.eup %1549 }
 0x14a   :  { %v210_v54 = vmul.f32 %v1550_v52, %v1548_v51 }
 0x14c   :  { %v215_v55 = vsel %vm213_vm1, %v210_v54, 0.0 }
 0x14d   :  { %v329_v56 = vrot.slane %v215_v55, %v1886_v53 }
 0x14f   :  { %v336_v57 = vrot.slane %v329_v56, %v1886_v53 }
 0x151   :  { %337 = vrot.lane.b32.xlu0 %v336_v57, %s1728_s0 }
 0x1a2   :  { %v201_v58 = vpop.permute.xlu0 %200 }
 0x1a3   :  { %v202_v59 = vrot.slane %v201_v58, 1 }
 0x1a5   :  { %v1340_v60 = vmul.f32 -1.442695, %v202_v59 }
 0x1a7   :  { %1551 = vpow2.f32 %v1340_v60 }
 0x1a8   :  { %1553 = vtanh.f32 %v210_v54 }
 0x1b1   :  { %v1552_v61 = vpop.eup %1551 }
 0x1b2   :  { %v207_v62 = vadd.f32 1.0, %v1552_v61  ;;  %v1554_v63 = vpop.eup %1553 }
 0x1b4   :  { %1555 = vrcp.f32 %v207_v62 }
 0x1be   :  { %v1556_v1 = vpop.eup %1555 }
 0x1bf   :  { %v212_v2 = vmul.f32 %v1556_v1, %v1554_v63 }
 0x1c1   :  { %v214_v3 = vsel %vm213_vm1, %v212_v2, 0.0 }
 0x1c2   :  { %1341 = vmatmul.mubr.msk.f32.vlgmr.msra.gmra.mrb[0].mxu1 %vm218_vm2, %v214_v3  ;;  %v485_v3 = vld [vmem:[#allocation2 + $0x3] ss:$8 sm:$0x3] }
 0x1c3   :  { %1427 = vmatpush1.bf16.msra.mxu1 %v1853_v26  ;;  %553 = vmatprep.mubr.f32.mxu1 %v1727_v0  ;;  %v338_v21 = vpop.permute.xlu0 %337 }
 0x1c4   :  { %1429 = vmatprep.subr.bf16.mxu1 %v1859_v30 }
 0x1c7   :  { %1431 = vmatpush1.bf16.msra.mxu1 %v1861_v34 }
 0x1c8   :  { %1433 = vmatprep.subr.bf16.mxu1 %v1863_v35 }
 0x1cb   :  { %1435 = vmatpush1.bf16.msra.mxu1 %v1868_v40 }
 0x1cc   :  { %1437 = vmatprep.subr.bf16.mxu1 %v1872_v41 }
 0x1cf   :  { %1439 = vmatpush1.bf16.msra.mxu1 %v1876_v46 }
 0x1d0   :  { %1457 = vmatprep.subr.bf16.mxu1 %v1851_v23 }
 0x295   :  { %v288_v4 = vpop.f32.mrb[0].mxu1 }
 0x296   :  { %v290_v5 = vpop.f32.mrb[1].mxu1 }
 0x297   :  { %v295_v6 = vcombine.low %v288_v4, %v290_v5 }
 0x299   :  { %v302_v7 = vrot.slane %v295_v6, %v1886_v53 }
 0x29b   :  { %v309_v8 = vrot.slane %v302_v7, %v1886_v53 }
 0x29d   :  { %v311_v13 = vadd.f32 %v309_v8, %v217_v11 }
 0x29f   :  { %v1342_v14 = vmul.f32 -1.442695, %v311_v13  ;;  %v319_v15 = vrot.slane %v311_v13, 1 }
 0x2a1   :  { %1557 = vpow2.f32 %v1342_v14 }
 0x2a2   :  { %1559 = vtanh.f32 %v319_v15 }
 0x2ab   :  { %v1558_v16 = vpop.eup %1557 }
 0x2ac   :  { %v315_v17 = vadd.f32 1.0, %v1558_v16  ;;  %v1560_v18 = vpop.eup %1559 }
 0x2ae   :  { %1561 = vrcp.f32 %v315_v17 }
 0x2b8   :  { %v1562_v19 = vpop.eup %1561 }
 0x2b9   :  { %v341_v20 = vmul.f32 %v1562_v19, %v1560_v18  ;;  %v340_v22 = vmul.f32 %v1562_v19, %v338_v21 }
 0x2bb   :  { %343 = vrot.lane.b32.xlu1 %v341_v20, %s1728_s0 }
 0x2bf   :  { %349 = vrot.lane.b32.xlu1 %v1562_v19, %s1728_s0 }
 0x32d   :  { %v344_v24 = vpop.permute.xlu1 %343 }
 0x32e   :  { %v346_v25 = vadd.f32 %v344_v24, %v340_v22 }
 0x330   :  { %1563 = vtanh.f32 %v346_v25 }
 0x331   :  { %v350_v28 = vpop.permute.xlu1 %349 }
 0x332   :  { %v351_v29 = vrot.slane %v350_v28, 1 }
 0x33a   :  { %v1564_v27 = vpop.eup %1563 }
 0x33b   :  { %354 = vrot.lane.b32.xlu0 %v1564_v27, %s1728_s0 }
 0x3ad   :  { %v355_v31 = vpop.permute.xlu0 %354 }
 0x3ae   :  { %v357_v32 = vmul.f32 %v355_v31, %v351_v29  ;;  %v609_v31 = vld [vmem:[#allocation2 + $0x4] ss:$8 sm:$0x3] }
 0x3b0   :  { %359 = vst.msk [vmem:[#allocation3] sm:$0x1] %vm358_vm3, %v357_v32  ;;  %1343 = vmatmul.mubr.msk.f32.vlgmr.msra.gmra.mrb[2].mxu0 %vm218_vm2, %v357_v32 }
 0x3b1   :  { %1443 = vmatpush1.bf16.msra.mxu0 %v1853_v26  ;;  %677 = vmatprep.mubr.f32.mxu0 %v1727_v0 }
 0x3b2   :  { %1445 = vmatprep.subr.bf16.mxu0 %v1859_v30 }
 0x3b5   :  { %1447 = vmatpush1.bf16.msra.mxu0 %v1861_v34 }
 0x3b6   :  { %1449 = vmatprep.subr.bf16.mxu0 %v1863_v35 }
 0x3b9   :  { %1451 = vmatpush1.bf16.msra.mxu0 %v1868_v40 }
 0x3ba   :  { %1453 = vmatprep.subr.bf16.mxu0 %v1872_v41 }
 0x3bd   :  { %1455 = vmatpush1.bf16.msra.mxu0 %v1876_v46 }
 0x3be   :  { %1473 = vmatprep.subr.bf16.mxu0 %v1851_v23 }
 0x483   :  { %v431_v33 = vpop.f32.mrb[2].mxu0 }
 0x484   :  { %v433_v36 = vpop.f32.mrb[3].mxu0 }
 0x485   :  { %v438_v37 = vcombine.low %v431_v33, %v433_v36 }
 0x487   :  { %v445_v38 = vrot.slane %v438_v37, %v1886_v53 }
 0x489   :  { %v452_v39 = vrot.slane %v445_v38, %v1886_v53 }
 0x48b   :  { %v454_v43 = vadd.f32 %v452_v39, %v361_v42 }
 0x48d   :  { %v1344_v44 = vmul.f32 -1.442695, %v454_v43  ;;  %v462_v45 = vrot.slane %v454_v43, 1 }
 0x48f   :  { %1565 = vpow2.f32 %v1344_v44 }
 0x490   :  { %1567 = vtanh.f32 %v462_v45 }
 0x499   :  { %v1566_v47 = vpop.eup %1565 }
 0x49a   :  { %v458_v48 = vadd.f32 1.0, %v1566_v47  ;;  %v1568_v49 = vpop.eup %1567 }
 0x49c   :  { %1569 = vrcp.f32 %v458_v48 }
 0x4a6   :  { %v1570_v50 = vpop.eup %1569 }
 0x4a7   :  { %474 = vrot.lane.b32.xlu0 %v1570_v50, %s1728_s0  ;;  %v466_v51 = vmul.f32 %v1570_v50, %v1568_v49  ;;  %v465_v52 = vmul.f32 %v1570_v50, %v346_v25 }
 0x4a9   :  { %468 = vrot.lane.b32.xlu1 %v466_v51, %s1728_s0 }
 0x519   :  { %v475_v57 = vpop.permute.xlu0 %474 }
 0x51a   :  { %v476_v58 = vrot.slane %v475_v57, 1 }
 0x51b   :  { %v469_v54 = vpop.permute.xlu1 %468 }
 0x51c   :  { %v471_v55 = vadd.f32 %v469_v54, %v465_v52 }
 0x51e   :  { %1571 = vtanh.f32 %v471_v55 }
 0x528   :  { %v1572_v56 = vpop.eup %1571 }
 0x529   :  { %479 = vrot.lane.b32.xlu1 %v1572_v56, %s1728_s0 }
 0x59b   :  { %v480_v59 = vpop.permute.xlu1 %479 }
 0x59c   :  { %v482_v60 = vmul.f32 %v480_v59, %v476_v58  ;;  %v733_v58 = vld [vmem:[#allocation2 + $0x5] ss:$8 sm:$0x3] }
 0x59e   :  { %483 = vst.msk [vmem:[#allocation3 + $0x1] sm:$0x1] %vm358_vm3, %v482_v60  ;;  %1345 = vmatmul.mubr.msk.f32.vlgmr.msra.gmra.mrb[2].mxu1 %vm218_vm2, %v482_v60 }
 0x59f   :  { %1459 = vmatpush1.bf16.msra.mxu1 %v1853_v26  ;;  %801 = vmatprep.mubr.f32.mxu1 %v1727_v0 }
 0x5a0   :  { %1461 = vmatprep.subr.bf16.mxu1 %v1859_v30 }
 0x5a3   :  { %1463 = vmatpush1.bf16.msra.mxu1 %v1861_v34 }
 0x5a4   :  { %1465 = vmatprep.subr.bf16.mxu1 %v1863_v35 }
 0x5a7   :  { %1467 = vmatpush1.bf16.msra.mxu1 %v1868_v40 }
 0x5a8   :  { %1469 = vmatprep.subr.bf16.mxu1 %v1872_v41 }
 0x5ab   :  { %1471 = vmatpush1.bf16.msra.mxu1 %v1876_v46 }
 0x5ac   :  { %1489 = vmatprep.subr.bf16.mxu1 %v1851_v23 }
 0x671   :  { %v555_v61 = vpop.f32.mrb[2].mxu1 }
 0x672   :  { %v557_v62 = vpop.f32.mrb[3].mxu1 }
 0x673   :  { %v562_v63 = vcombine.low %v555_v61, %v557_v62 }
 0x675   :  { %v569_v1 = vrot.slane %v562_v63, %v1886_v53 }
 0x677   :  { %v576_v2 = vrot.slane %v569_v1, %v1886_v53 }
 0x679   :  { %v578_v4 = vadd.f32 %v576_v2, %v485_v3 }
 0x67b   :  { %v1346_v5 = vmul.f32 -1.442695, %v578_v4  ;;  %v586_v6 = vrot.slane %v578_v4, 1 }
 0x67d   :  { %1573 = vpow2.f32 %v1346_v5 }
 0x67e   :  { %1575 = vtanh.f32 %v586_v6 }
 0x687   :  { %v1574_v7 = vpop.eup %1573 }
 0x688   :  { %v582_v8 = vadd.f32 1.0, %v1574_v7  ;;  %v1576_v11 = vpop.eup %1575 }
 0x68a   :  { %1577 = vrcp.f32 %v582_v8 }
 0x694   :  { %v1578_v13 = vpop.eup %1577 }
 0x695   :  { %598 = vrot.lane.b32.xlu1 %v1578_v13, %s1728_s0  ;;  %v590_v14 = vmul.f32 %v1578_v13, %v1576_v11  ;;  %v589_v15 = vmul.f32 %v1578_v13, %v471_v55 }
 0x697   :  { %592 = vrot.lane.b32.xlu0 %v590_v14, %s1728_s0 }
 0x707   :  { %v599_v19 = vpop.permute.xlu1 %598 }
 0x708   :  { %v600_v20 = vrot.slane %v599_v19, 1  ;;  %v857_v19 = vld [vmem:[#allocation2 + $0x6] ss:$8 sm:$0x3] }
 0x709   :  { %v593_v16 = vpop.permute.xlu0 %592 }
 0x70a   :  { %v595_v17 = vadd.f32 %v593_v16, %v589_v15 }
 0x70c   :  { %1579 = vtanh.f32 %v595_v17 }
 0x716   :  { %v1580_v18 = vpop.eup %1579 }
 0x717   :  { %603 = vrot.lane.b32.xlu0 %v1580_v18, %s1728_s0 }
 0x789   :  { %v604_v21 = vpop.permute.xlu0 %603 }
 0x78a   :  { %v606_v22 = vmul.f32 %v604_v21, %v600_v20 }
 0x78c   :  { %607 = vst.msk [vmem:[#allocation3 + $0x2] sm:$0x1] %vm358_vm3, %v606_v22  ;;  %1347 = vmatmul.mubr.msk.f32.vlgmr.msra.gmra.mrb[4].mxu0 %vm218_vm2, %v606_v22 }
 0x78d   :  { %1475 = vmatpush1.bf16.msra.mxu0 %v1853_v26  ;;  %925 = vmatprep.mubr.f32.mxu0 %v1727_v0 }
 0x78e   :  { %1477 = vmatprep.subr.bf16.mxu0 %v1859_v30 }
 0x791   :  { %1479 = vmatpush1.bf16.msra.mxu0 %v1861_v34 }
 0x792   :  { %1481 = vmatprep.subr.bf16.mxu0 %v1863_v35 }
 0x795   :  { %1483 = vmatpush1.bf16.msra.mxu0 %v1868_v40 }
 0x796   :  { %1485 = vmatprep.subr.bf16.mxu0 %v1872_v41 }
 0x799   :  { %1487 = vmatpush1.bf16.msra.mxu0 %v1876_v46 }
 0x79a   :  { %1505 = vmatprep.subr.bf16.mxu0 %v1851_v23 }
 0x85f   :  { %v679_v24 = vpop.f32.mrb[4].mxu0 }
 0x860   :  { %v681_v25 = vpop.f32.mrb[5].mxu0 }
 0x861   :  { %v686_v27 = vcombine.low %v679_v24, %v681_v25 }
 0x863   :  { %v693_v28 = vrot.slane %v686_v27, %v1886_v53 }
 0x865   :  { %v700_v29 = vrot.slane %v693_v28, %v1886_v53 }
 0x867   :  { %v702_v32 = vadd.f32 %v700_v29, %v609_v31 }
 0x869   :  { %v1348_v33 = vmul.f32 -1.442695, %v702_v32  ;;  %v710_v36 = vrot.slane %v702_v32, 1 }
 0x86b   :  { %1581 = vpow2.f32 %v1348_v33 }
 0x86c   :  { %1583 = vtanh.f32 %v710_v36 }
 0x875   :  { %v1582_v37 = vpop.eup %1581 }
 0x876   :  { %v706_v38 = vadd.f32 1.0, %v1582_v37  ;;  %v1584_v39 = vpop.eup %1583 }
 0x878   :  { %1585 = vrcp.f32 %v706_v38 }
 0x882   :  { %v1586_v42 = vpop.eup %1585 }
 0x883   :  { %722 = vrot.lane.b32.xlu0 %v1586_v42, %s1728_s0  ;;  %v714_v23 = vmul.f32 %v1586_v42, %v1584_v39  ;;  %v713_v43 = vmul.f32 %v1586_v42, %v595_v17  ;;  %v981_v42 = vld [vmem:[#allocation2 + $0x7] ss:$8 sm:$0x3] }
 0x885   :  { %716 = vrot.lane.b32.xlu1 %v714_v23, %s1728_s0 }
 0x8f5   :  { %v723_v48 = vpop.permute.xlu0 %722 }
 0x8f6   :  { %v724_v49 = vrot.slane %v723_v48, 1 }
 0x8f7   :  { %v717_v44 = vpop.permute.xlu1 %716 }
 0x8f8   :  { %v719_v45 = vadd.f32 %v717_v44, %v713_v43 }
 0x8fa   :  { %1587 = vtanh.f32 %v719_v45 }
 0x904   :  { %v1588_v47 = vpop.eup %1587 }
 0x905   :  { %727 = vrot.lane.b32.xlu1 %v1588_v47, %s1728_s0 }
 0x977   :  { %v728_v50 = vpop.permute.xlu1 %727 }
 0x978   :  { %v730_v51 = vmul.f32 %v728_v50, %v724_v49 }
 0x97a   :  { %731 = vst.msk [vmem:[#allocation3 + $0x3] sm:$0x1] %vm358_vm3, %v730_v51  ;;  %1349 = vmatmul.mubr.msk.f32.vlgmr.msra.gmra.mrb[4].mxu1 %vm218_vm2, %v730_v51 }
 0x97b   :  { %1491 = vmatpush1.bf16.msra.mxu1 %v1853_v26  ;;  %1049 = vmatprep.mubr.f32.mxu1 %v1727_v0 }
 0x97c   :  { %1493 = vmatprep.subr.bf16.mxu1 %v1859_v30 }
 0x97f   :  { %1495 = vmatpush1.bf16.msra.mxu1 %v1861_v34 }
 0x980   :  { %1497 = vmatprep.subr.bf16.mxu1 %v1863_v35 }
 0x983   :  { %1499 = vmatpush1.bf16.msra.mxu1 %v1868_v40 }
 0x984   :  { %1501 = vmatprep.subr.bf16.mxu1 %v1872_v41 }
 0x987   :  { %1503 = vmatpush1.bf16.msra.mxu1 %v1876_v46 }
 0xa4d   :  { %v803_v52 = vpop.f32.mrb[4].mxu1 }
 0xa4e   :  { %v805_v54 = vpop.f32.mrb[5].mxu1 }
 0xa4f   :  { %v810_v55 = vcombine.low %v803_v52, %v805_v54 }
 0xa51   :  { %v817_v56 = vrot.slane %v810_v55, %v1886_v53 }
 0xa53   :  { %v824_v57 = vrot.slane %v817_v56, %v1886_v53 }
 0xa55   :  { %v826_v59 = vadd.f32 %v824_v57, %v733_v58 }
 0xa57   :  { %v1350_v60 = vmul.f32 -1.442695, %v826_v59  ;;  %v834_v61 = vrot.slane %v826_v59, 1  ;;  %v1104_v59 = vld [vmem:[%s2024_s2] sm:$0x3] }
 0xa59   :  { %1589 = vpow2.f32 %v1350_v60  ;;  %v1109_v60 = vrot.slane %v1104_v59, %v1841_v10 }
 0xa5a   :  { %1591 = vtanh.f32 %v834_v61 }
 0xa63   :  { %v1590_v62 = vpop.eup %1589 }
 0xa64   :  { %v830_v63 = vadd.f32 1.0, %v1590_v62  ;;  %v1592_v1 = vpop.eup %1591 }
 0xa66   :  { %1593 = vrcp.f32 %v830_v63 }
 0xa70   :  { %v1594_v2 = vpop.eup %1593 }
 0xa71   :  { %846 = vrot.lane.b32.xlu1 %v1594_v2, %s1728_s0  ;;  %v838_v3 = vmul.f32 %v1594_v2, %v1592_v1  ;;  %v837_v4 = vmul.f32 %v1594_v2, %v719_v45  ;;  %v1113_v2 = vrot.slane %v1104_v59, %v92_v12  ;;  %v1221_v12 = vld [vmem:[#allocation8 + $0x18] sm:$0xff] }
 0xa73   :  { %840 = vrot.lane.b32.xlu0 %v838_v3, %s1728_s0 }
 0xae3   :  { %v847_v8 = vpop.permute.xlu1 %846 }
 0xae4   :  { %v848_v11 = vrot.slane %v847_v8, 1 }
 0xae5   :  { %v841_v5 = vpop.permute.xlu0 %840 }
 0xae6   :  { %v843_v6 = vadd.f32 %v841_v5, %v837_v4 }
 0xae8   :  { %1595 = vtanh.f32 %v843_v6 }
 0xaf2   :  { %v1596_v7 = vpop.eup %1595 }
 0xaf3   :  { %851 = vrot.lane.b32.xlu0 %v1596_v7, %s1728_s0 }
 0xb65   :  { %v852_v13 = vpop.permute.xlu0 %851 }
 0xb66   :  { %v854_v14 = vmul.f32 %v852_v13, %v848_v11  ;;  %v1218_v13 = vld [vmem:[#allocation8] sm:$0xff] }
 0xb68   :  { %855 = vst.msk [vmem:[#allocation3 + $0x4] sm:$0x1] %vm358_vm3, %v854_v14  ;;  %1351 = vmatmul.mubr.msk.f32.vlgmr.msra.gmra.mrb[6].mxu0 %vm218_vm2, %v854_v14  ;;  %v1219_v14 = vld [vmem:[#allocation8 + $0x8] sm:$0xff] }
 0xb69   :  { %1507 = vmatpush1.bf16.msra.mxu0 %v1853_v26  ;;  %1183 = vmatprep.mubr.f32.mxu0 %v1727_v0  ;;  %v1521_v9 = vpack.c.bf16 %v1219_v14, %v1218_v13 }
 0xb6a   :  { %1509 = vmatprep.subr.bf16.mxu0 %v1859_v30 }
 0xb6d   :  { %1511 = vmatpush1.bf16.msra.mxu0 %v1861_v34 }
 0xb6e   :  { %1513 = vmatprep.subr.bf16.mxu0 %v1863_v35 }
 0xb71   :  { %1515 = vmatpush1.bf16.msra.mxu0 %v1868_v40 }
 0xb72   :  { %1517 = vmatprep.subr.bf16.mxu0 %v1872_v41 }
 0xb75   :  { %1519 = vmatpush1.bf16.msra.mxu0 %v1876_v46 }
 0xc3b   :  { %v927_v15 = vpop.f32.mrb[6].mxu0 }
 0xc3c   :  { %v929_v16 = vpop.f32.mrb[7].mxu0 }
 0xc3d   :  { %v934_v17 = vcombine.low %v927_v15, %v929_v16  ;;  %v1220_v15 = vld [vmem:[#allocation8 + $0x10] sm:$0xff]  ;;  %v1730_v16 = vmov 0.0|0.0  }
 0xc3e   :  { %1520 = vmatprep.subr.bf16.mxu1 %v1730_v16 }
 0xc3f   :  { %v941_v18 = vrot.slane %v934_v17, %v1886_v53  ;;  %v1524_v17 = vpack.c.bf16 %v1221_v12, %v1220_v15 }
 0xc41   :  { %v948_v26 = vrot.slane %v941_v18, %v1886_v53 }
 0xc43   :  { %v950_v20 = vadd.f32 %v948_v26, %v857_v19 }
 0xc45   :  { %v1352_v30 = vmul.f32 -1.442695, %v950_v20  ;;  %v958_v34 = vrot.slane %v950_v20, 1 }
 0xc47   :  { %1597 = vpow2.f32 %v1352_v30 }
 0xc48   :  { %1599 = vtanh.f32 %v958_v34  ;;  %v1222_v34 = vld [vmem:[#allocation8 + $0x20] sm:$0xff] }
 0xc51   :  { %v1598_v21 = vpop.eup %1597 }
 0xc52   :  { %v954_v35 = vadd.f32 1.0, %v1598_v21  ;;  %v1600_v40 = vpop.eup %1599  ;;  %v1223_v21 = vld [vmem:[#allocation8 + $0x28] sm:$0xff] }
 0xc54   :  { %1601 = vrcp.f32 %v954_v35  ;;  %v1527_v35 = vpack.c.bf16 %v1223_v21, %v1222_v34 }
 0xc5e   :  { %v1602_v41 = vpop.eup %1601 }
 0xc5f   :  { %970 = vrot.lane.b32.xlu0 %v1602_v41, %s1728_s0  ;;  %v962_v46 = vmul.f32 %v1602_v41, %v1600_v40  ;;  %v961_v22 = vmul.f32 %v1602_v41, %v843_v6  ;;  %v1224_v40 = vld [vmem:[#allocation8 + $0x30] sm:$0xff]  ;;  %v1225_v41 = vld [vmem:[#allocation8 + $0x38] sm:$0xff] }
 0xc61   :  { %964 = vrot.lane.b32.xlu1 %v962_v46, %s1728_s0  ;;  %v1530_v46 = vpack.c.bf16 %v1225_v41, %v1224_v40 }
 0xcd1   :  { %v971_v28 = vpop.permute.xlu0 %970 }
 0xcd2   :  { %v972_v29 = vrot.slane %v971_v28, 1 }
 0xcd3   :  { %v965_v24 = vpop.permute.xlu1 %964 }
 0xcd4   :  { %v967_v25 = vadd.f32 %v965_v24, %v961_v22 }
 0xcd6   :  { %1603 = vtanh.f32 %v967_v25 }
 0xce0   :  { %v1604_v27 = vpop.eup %1603 }
 0xce1   :  { %975 = vrot.lane.b32.xlu1 %v1604_v27, %s1728_s0 }
 0xd53   :  { %v976_v31 = vpop.permute.xlu1 %975 }
 0xd54   :  { %v978_v32 = vmul.f32 %v976_v31, %v972_v29 }
 0xd56   :  { %979 = vst.msk [vmem:[#allocation3 + $0x5] sm:$0x1] %vm358_vm3, %v978_v32  ;;  %1353 = vmatmul.mubr.msk.f32.vlgmr.msra.gmra.mrb[6].mxu1 %vm218_vm2, %v978_v32 }
 0xd57   :  { %1522 = vmatpush3.bf16.msra.mxu1 %v1521_v9  ;;  %1385 = vmatprep.mubr.msk.f32.mxu1 %vm1731_vm4, %v1727_v0 }
 0xd58   :  { %1523 = vmatprep.subr.bf16.mxu1 %v1730_v16 }
 0xd5b   :  { %1525 = vmatpush3.bf16.msra.mxu1 %v1524_v17 }
 0xd5c   :  { %1526 = vmatprep.subr.bf16.mxu1 %v1730_v16 }
 0xd5f   :  { %1528 = vmatpush3.bf16.msra.mxu1 %v1527_v35 }
 0xd60   :  { %1529 = vmatprep.subr.bf16.mxu1 %v1730_v16 }
 0xd63   :  { %1531 = vmatpush3.bf16.msra.mxu1 %v1530_v46 }
 0xe29   :  { %v1051_v33 = vpop.f32.mrb[6].mxu1 }
 0xe2a   :  { %v1053_v36 = vpop.f32.mrb[7].mxu1 }
 0xe2b   :  { %v1058_v37 = vcombine.low %v1051_v33, %v1053_v36  ;;  %v1358_v33 = vld [vmem:[#allocation9] ss:$0 sm:$0xff] }
 0xe2d   :  { %v1065_v38 = vrot.slane %v1058_v37, %v1886_v53 }
 0xe2f   :  { %v1072_v39 = vrot.slane %v1065_v38, %v1886_v53 }
 0xe31   :  { %v1074_v23 = vadd.f32 %v1072_v39, %v981_v42 }
 0xe33   :  { %v1354_v43 = vmul.f32 -1.442695, %v1074_v23  ;;  %v1082_v44 = vrot.slane %v1074_v23, 1 }
 0xe35   :  { %1605 = vpow2.f32 %v1354_v43 }
 0xe36   :  { %1607 = vtanh.f32 %v1082_v44 }
 0xe3f   :  { %v1606_v45 = vpop.eup %1605 }
 0xe40   :  { %v1078_v47 = vadd.f32 1.0, %v1606_v45  ;;  %v1608_v48 = vpop.eup %1607 }
 0xe42   :  { %1609 = vrcp.f32 %v1078_v47 }
 0xe4c   :  { %v1610_v49 = vpop.eup %1609 }
 0xe4d   :  { %1094 = vrot.lane.b32.xlu1 %v1610_v49, %s1728_s0  ;;  %v1086_v50 = vmul.f32 %v1610_v49, %v1608_v48  ;;  %v1085_v51 = vmul.f32 %v1610_v49, %v967_v25 }
 0xe4f   :  { %1088 = vrot.lane.b32.xlu0 %v1086_v50, %s1728_s0 }
 0xebf   :  { %v1095_v55 = vpop.permute.xlu1 %1094 }
 0xec0   :  { %v1096_v56 = vrot.slane %v1095_v55, 1 }
 0xec1   :  { %v1089_v52 = vpop.permute.xlu0 %1088 }
 0xec2   :  { %v1091_v54 = vadd.f32 %v1089_v52, %v1085_v51 }
 0xec4   :  { %1611 = vtanh.f32 %v1091_v54  ;;  %v1313_v11 = vrot.slane %v1091_v54, %v1841_v10 }
 0xece   :  { %v1612_v53 = vpop.eup %1611 }
 0xecf   :  { %1099 = vrot.lane.b32.xlu0 %v1612_v53, %s1728_s0 }
 0xf41   :  { %v1100_v57 = vpop.permute.xlu0 %1099 }
 0xf42   :  { %v1102_v58 = vmul.f32 %v1100_v57, %v1096_v56 }
 0xf44   :  { %1103 = vst.msk [vmem:[#allocation3 + $0x6] sm:$0x1] %vm358_vm3, %v1102_v58  ;;  %1355 = vmatmul.mubr.msk.f32.vlgmr.msra.gmra.mrb[8].mxu0 %vm218_vm2, %v1102_v58 }
0x1017   :  { %v1185_v61 = vpop.f32.mrb[8].mxu0 }
0x1018   :  { %v1186_v62 = vadd.f32 %v1185_v61, %v1109_v60  ;;  %v1187_v63 = vpop.f32.mrb[9].mxu0 }
0x1019   :  { %v1188_v3 = vadd.f32 %v1187_v63, %v1113_v2 }
0x101a   :  { %v1356_v1 = vmul.f32 -1.442695, %v1186_v62 }
0x101b   :  { %v1357_v18 = vmul.f32 -1.442695, %v1188_v3 }
0x101c   :  { %1613 = vpow2.f32 %v1356_v1 }
0x101d   :  { %1615 = vtanh.f32 %v1188_v3 }
0x1026   :  { %v1614_v4 = vpop.eup %1613 }
0x1027   :  { %v1196_v5 = vadd.f32 1.0, %v1614_v4  ;;  %v1616_v6 = vpop.eup %1615 }
0x1029   :  { %1617 = vrcp.f32 %v1196_v5 }
0x102a   :  { %1619 = vpow2.f32 %v1357_v18 }
0x1033   :  { %v1618_v7 = vpop.eup %1617 }
0x1034   :  { %v1204_v8 = vmul.f32 %v1618_v7, %v1616_v6  ;;  %v1620_v26 = vpop.eup %1619  ;;  %v1203_v20 = vmul.f32 %v1618_v7, %v1091_v54 }
0x1035   :  { %v1197_v19 = vadd.f32 1.0, %v1620_v26 }
0x1036   :  { %1206 = vrot.lane.b32.xlu1 %v1204_v8, %s1728_s0 }
0x1037   :  { %1621 = vrcp.f32 %v1197_v19 }
0x103a   :  { %1314 = vrot.lane.b32.xlu1 %v1313_v11, %s1728_s0 }
0x1041   :  { %v1622_v22 = vpop.eup %1621 }
0x10a8   :  { %v1207_v10 = vpop.permute.xlu1 %1206 }
0x10a9   :  { %v1209_v30 = vadd.f32 %v1207_v10, %v1203_v20 }
0x10ab   :  { %1623 = vtanh.f32 %v1209_v30 }
0x10ac   :  { %v1315_v29 = vpop.permute.xlu1 %1314 }
0x10b5   :  { %v1624_v24 = vpop.eup %1623 }
0x10b6   :  { %v1211_v25 = vmul.f32 %v1624_v24, %v1622_v22 }
0x10b8   :  { %1213 = vrot.lane.b32.xlu0 %v1211_v25, %s1728_s0 }
0x10bc   :  { %1318 = vrot.lane.b32.xlu0 %v1209_v30, %s1728_s0 }
0x112a   :  { %v1214_v27 = vpop.permute.xlu0 %1213 }
0x112b   :  { %1216 = vst.msk [vmem:[#allocation3 + $0x7] sm:$0x1] %vm358_vm3, %v1214_v27  ;;  %v1307_v28 = vsel %vm213_vm1, %v1102_v58, %v1214_v27 }
0x112c   :  { %1308 = vst.msk [vmem:[%s2029_s7] sm:$0x1] %vm358_vm3, %v1307_v28 }
0x112e   :  { %v1319_v0 = vpop.permute.xlu0 %1318 }
0x112f   :  { %v1321_v31 = vsel %vm213_vm1, %v1315_v29, %v1319_v0 }
0x1130   :  { %1322 = vst.msk [vmem:[%s2030_s8] sm:$0x1] %vm358_vm3, %v1321_v31 }
0x1132   :  { %v1217_v32 = vld [vmem:[#allocation3] sm:$0xff] }
0x1133   :  { %1386 = vmatmul.mubr.msk.f32.vlgmr.msra.gmra.mrb[8].mxu1 %vm218_vm2, %v1217_v32 }
0x1206   :  { %v1302_v36 = vpop.f32.mrb[8].mxu1 }
0x1207   :  { %v1303_v37 = vadd.f32 %v1358_v33, %v1302_v36  ;;  %v1387_v38 = vpop.f32.mrb[9].mxu1 }
0x1209   :  { %1306 = vst [vmem:[%s2028_s6] sm:$0xff] %v1303_v37 }
0x120a   :  { %1335 = vsyncpa [#allocation5], 1 }
0x120b   :  { %1336 = vsyncpa [#allocation7], 1 }
0x120c   :  { %1337 = vsyncpa [#allocation10], 1 }

</bundles_post_ra>
